<compile_context>
chip_gen: v7x
topology: tpu7x:2x2x1
jax: 0.10.0
libtpu: 0.0.40
codegen_flags: <defaults>
</compile_context>

<pallas_src>
import functools

import jax
import jax.numpy as jnp
from jax.experimental import pallas as pl
from jax.experimental.pallas import tpu as pltpu


def _lflb_kernel(x_ref, w_ref, b_ref, g_ref, bt_ref, out_ref,
                 col_ref, yall_ref, *,
                 n, l, l_conv, l_pool, c_in, c_out, k_cnn, padding_cnn,
                 k_pool, stride_pool, eps):
    # x_ref    : (1, C_in, L)        one batch sample, original NCL layout
    # w_ref    : (C_out, K*C_in)     im2col-packed conv weight
    # b_ref    : (C_out, 1)          conv bias
    # g_ref    : (C_out, 1)          batchnorm gamma
    # bt_ref   : (C_out, 1)          batchnorm beta
    # out_ref  : (N, C_out, L_pool)  full output block (written on last step)
    # col_ref  : (K*C_in, L_conv)    im2col scratch (pad columns stay zero)
    # yall_ref : (N, C_out, L_conv)  f32 conv+bias results for all samples
    step = pl.program_id(0)

    # Zero the im2col scratch once; padding columns stay zero for every step
    # because each step only overwrites the valid (in-range) columns.
    @pl.when(step == 0)
    def _():
        col_ref[...] = jnp.zeros_like(col_ref)

    # ---- im2col build (in-kernel padding, static slices only) --------------
    for k in range(k_cnn):
        start_out = max(0, padding_cnn - k)
        end_out = min(l_conv, l + padding_cnn - k)
        count = end_out - start_out
        if count <= 0:
            continue
        start_in = start_out + k - padding_cnn
        col_ref[pl.ds(k * c_in, c_in), pl.ds(start_out, count)] = \
            x_ref[0, :, pl.ds(start_in, count)]

    # ---- Conv1d: one fused matmul (C_out, K*C_in) @ (K*C_in, L_conv) --------
    y = jnp.dot(w_ref[...], col_ref[...], preferred_element_type=jnp.float32)
    y = y + b_ref[...]                                    # (C_out, L_conv)
    yall_ref[step] = y

    # ---- Last step: BatchNorm (batch stats) + ReLU + MaxPool + store --------
    @pl.when(step == n - 1)
    def _():
        y_all = yall_ref[...]                             # (N, C_out, L_conv) f32
        # two-pass (centered) biased batch statistics over (N, L)
        mean = jnp.mean(jnp.mean(y_all, axis=2, keepdims=True),
                        axis=0, keepdims=True)            # (1, C_out, 1)
        cen = y_all - mean
        var = jnp.mean(jnp.mean(cen * cen, axis=2, keepdims=True),
                       axis=0, keepdims=True)             # (1, C_out, 1)
        scale = g_ref[...] * jax.lax.rsqrt(var + eps)     # (1, C_out, 1)
        shift = bt_ref[...] - mean * scale                # (1, C_out, 1)
        y_norm = jnp.maximum(y_all * scale + shift, 0.0)  # fused affine + ReLU

        # MaxPool1d along the lane (L) axis via 0/1 selection matmuls: the
        # selector picks element p*stride_pool + j exactly (one 1.0 per col),
        # so the dot is an exact gather on the MXU; max over j gives the pool.
        y2d = y_norm.reshape(n * c_out, l_conv)
        l_idx = jax.lax.broadcasted_iota(jnp.int32, (l_conv, l_pool), 0)
        p_idx = jax.lax.broadcasted_iota(jnp.int32, (l_conv, l_pool), 1)
        pooled = None
        for j in range(k_pool):
            sel = (l_idx == p_idx * stride_pool + j).astype(jnp.float32)
            cand = jnp.dot(y2d, sel, preferred_element_type=jnp.float32)
            pooled = cand if pooled is None else jnp.maximum(pooled, cand)

        out_ref[...] = pooled.reshape(n, c_out, l_pool).astype(out_ref.dtype)


def lflb_forward(x, w, b, gamma, beta, *, stride_cnn=1, padding_cnn=1,
                 kernel_size_pool=2, stride_pool=2, padding_pool=0, eps=1e-5):
    """x: (N, C_in, L) PyTorch NCL; w: (C_out, C_in, K) PyTorch Conv1d weight.

    Returns (N, C_out, L_pool) in the PyTorch layout (no wrapper transpose).
    """
    n, c_in, l = x.shape
    c_out, _, k_cnn = w.shape
    assert stride_cnn == 1, "TODO(synk): strided conv not implemented"
    assert padding_pool == 0, "TODO(synk): padded max-pool not implemented"
    l_conv = (l + 2 * padding_cnn - k_cnn) // stride_cnn + 1
    l_pool = (l_conv - kernel_size_pool) // stride_pool + 1
    assert l_conv >= 1 and l_pool >= 1

    # im2col weight packing: w2[o, k*C_in + i] = w[o, i, k]
    w2 = jnp.transpose(w, (0, 2, 1)).reshape(c_out, k_cnn * c_in)
    b2 = b.reshape(c_out, 1).astype(jnp.float32)
    g2 = gamma.reshape(c_out, 1).astype(jnp.float32)
    bt2 = beta.reshape(c_out, 1).astype(jnp.float32)

    kernel = functools.partial(
        _lflb_kernel, n=n, l=l, l_conv=l_conv, l_pool=l_pool,
        c_in=c_in, c_out=c_out, k_cnn=k_cnn, padding_cnn=padding_cnn,
        k_pool=kernel_size_pool, stride_pool=stride_pool, eps=eps)

    out = pl.pallas_call(
        kernel,
        out_shape=jax.ShapeDtypeStruct((n, c_out, l_pool), x.dtype),
        grid=(n,),
        in_specs=[
            pl.BlockSpec((1, c_in, l), lambda i: (i, 0, 0)),          # x (per sample)
            pl.BlockSpec((c_out, k_cnn * c_in), lambda i: (0, 0)),    # w2
            pl.BlockSpec((c_out, 1), lambda i: (0, 0)),               # bias
            pl.BlockSpec((c_out, 1), lambda i: (0, 0)),               # gamma
            pl.BlockSpec((c_out, 1), lambda i: (0, 0)),               # beta
        ],
        # Output block is resident across the whole ("arbitrary") grid axis and
        # written once on the final step (BN stats need all samples).
        out_specs=pl.BlockSpec((n, c_out, l_pool), lambda i: (0, 0, 0)),
        scratch_shapes=[
            pltpu.VMEM((k_cnn * c_in, l_conv), x.dtype),     # im2col buffer
            pltpu.VMEM((n, c_out, l_conv), jnp.float32),     # conv+bias results
        ],
        compiler_params=pltpu.CompilerParams(
            dimension_semantics=("arbitrary",)),
    )(x, w2, b2, g2, bt2)

    return out


def _reference(x, w, b, gamma, beta, *, stride_cnn=1, padding_cnn=1,
               kernel_size_pool=2, stride_pool=2, eps=1e-5):
    """Pure-JAX reference matching the PyTorch forward (training-mode BN)."""
    out = jax.lax.conv_general_dilated(
        x, w, window_strides=(stride_cnn,),
        padding=[(padding_cnn, padding_cnn)],
        dimension_numbers=("NCH", "OIH", "NCH"))
    out = out + b[None, :, None]
    mean = jnp.mean(out, axis=(0, 2), keepdims=True)
    var = jnp.mean((out - mean) ** 2, axis=(0, 2), keepdims=True)
    out = (out - mean) * jax.lax.rsqrt(var + eps)
    out = out * gamma[None, :, None] + beta[None, :, None]
    out = jnp.maximum(out, 0.0)
    n, c, lc = out.shape
    lp = (lc - kernel_size_pool) // stride_pool + 1
    windows = jnp.stack(
        [out[:, :, j: j + (lp - 1) * stride_pool + 1: stride_pool]
         for j in range(kernel_size_pool)], axis=-1)
    return jnp.max(windows, axis=-1)


if __name__ == "__main__":
    # Module hyper-params: in_channels=4, out_channels=8, kernel_size_cnn=3,
    # stride_cnn=1, padding_cnn=1, kernel_size_pool=2, stride_pool=2, padding_pool=0
    N, C_IN, C_OUT, L, K = 4, 4, 8, 32, 3

    key = jax.random.PRNGKey(0)
    kx, kw, kb, kg, kbt = jax.random.split(key, 5)
    x = jax.random.normal(kx, (N, C_IN, L), jnp.float32)
    fan_in = C_IN * K
    w = jax.random.normal(kw, (C_OUT, C_IN, K), jnp.float32) / jnp.sqrt(fan_in)
    b = 0.1 * jax.random.normal(kb, (C_OUT,), jnp.float32)
    gamma = 1.0 + 0.1 * jax.random.normal(kg, (C_OUT,), jnp.float32)
    beta = 0.1 * jax.random.normal(kbt, (C_OUT,), jnp.float32)

    out = lflb_forward(x, w, b, gamma, beta)
    out = jax.block_until_ready(out)

    ref = _reference(x, w, b, gamma, beta)
    assert out.shape == ref.shape == (N, C_OUT, 16), (out.shape, ref.shape)
    err = float(jnp.max(jnp.abs(out - ref)))
    assert err < 1e-4, f"max abs error vs reference: {err}"
    print("KERNEL_OK")
</pallas_src>

<mosaic_0001>
module attributes {stable_mosaic.version = 11 : i64} {
  func.func @_lflb_kernel(%arg0: i32, %arg1: memref<1x4x32xf32, #tpu.memory_space<vmem>>, %arg2: memref<8x12xf32, #tpu.memory_space<vmem>>, %arg3: memref<8x1xf32, #tpu.memory_space<vmem>>, %arg4: memref<8x1xf32, #tpu.memory_space<vmem>>, %arg5: memref<8x1xf32, #tpu.memory_space<vmem>>, %arg6: memref<4x8x16xf32, #tpu.memory_space<vmem>>, %arg7: memref<12x32xf32, #tpu.memory_space<vmem>>, %arg8: memref<4x8x32xf32, #tpu.memory_space<vmem>>) attributes {dimension_semantics = [#tpu.dimension_semantics<arbitrary>], iteration_bounds = array<i64: 4>, scalar_prefetch = 0 : i64, scratch_operands = 2 : i64, tpu.core_type = #tpu.core_type<tc>, window_params = [{transform_indices = @transform_0, window_bounds = array<i64: 1, 4, 32>}, {pipeline_mode = #tpu.pipeline_mode<synchronous>, transform_indices = @transform_1, window_bounds = array<i64: 8, 12>}, {pipeline_mode = #tpu.pipeline_mode<synchronous>, transform_indices = @transform_2, window_bounds = array<i64: 8, 1>}, {pipeline_mode = #tpu.pipeline_mode<synchronous>, transform_indices = @transform_3, window_bounds = array<i64: 8, 1>}, {pipeline_mode = #tpu.pipeline_mode<synchronous>, transform_indices = @transform_4, window_bounds = array<i64: 8, 1>}, {pipeline_mode = #tpu.pipeline_mode<synchronous>, transform_indices = @transform_5, window_bounds = array<i64: 4, 8, 16>}]} {
    %c0_i32 = arith.constant 0 : i32
    %0 = arith.cmpi eq, %arg0, %c0_i32 : i32
    %1 = arith.extui %0 : i1 to i32
    %c0_i32_0 = arith.constant 0 : i32
    %2 = arith.cmpi ne, %1, %c0_i32_0 : i32
    scf.if %2 {
      %cst_21 = arith.constant 0.000000e+00 : f32
      %25 = vector.broadcast %cst_21 : f32 to vector<12x32xf32>
      %c0_22 = arith.constant 0 : index
      %c0_23 = arith.constant 0 : index
      %26 = vector.load %arg7[%c0_22, %c0_23] : memref<12x32xf32, #tpu.memory_space<vmem>>, vector<12x32xf32>
      tpu.vector_store %arg7[%c0_22, %c0_23], %25 {strides = array<i32>} : memref<12x32xf32, #tpu.memory_space<vmem>>, vector<12x32xf32>,
    } else {
    }
    %c0 = arith.constant 0 : index
    %c0_1 = arith.constant 0 : index
    %c0_2 = arith.constant 0 : index
    %3 = vector.load %arg1[%c0, %c0_1, %c0_2] : memref<1x4x32xf32, #tpu.memory_space<vmem>>, vector<1x4x31xf32>
    %4 = vector.shape_cast %3 : vector<1x4x31xf32> to vector<4x31xf32>
    %c0_3 = arith.constant 0 : index
    %c1 = arith.constant 1 : index
    %5 = vector.load %arg7[%c0_3, %c1] : memref<12x32xf32, #tpu.memory_space<vmem>>, vector<4x31xf32>
    tpu.vector_store %arg7[%c0_3, %c1], %4 {strides = array<i32>} : memref<12x32xf32, #tpu.memory_space<vmem>>, vector<4x31xf32>,
    %c0_4 = arith.constant 0 : index
    %c0_5 = arith.constant 0 : index
    %c0_6 = arith.constant 0 : index
    %6 = vector.load %arg1[%c0_4, %c0_5, %c0_6] : memref<1x4x32xf32, #tpu.memory_space<vmem>>, vector<1x4x32xf32>
    %7 = vector.shape_cast %6 : vector<1x4x32xf32> to vector<4x32xf32>
    %c4 = arith.constant 4 : index
    %c0_7 = arith.constant 0 : index
    %8 = vector.load %arg7[%c4, %c0_7] : memref<12x32xf32, #tpu.memory_space<vmem>>, vector<4x32xf32>
    tpu.vector_store %arg7[%c4, %c0_7], %7 {strides = array<i32>} : memref<12x32xf32, #tpu.memory_space<vmem>>, vector<4x32xf32>,
    %c0_8 = arith.constant 0 : index
    %c0_9 = arith.constant 0 : index
    %c1_10 = arith.constant 1 : index
    %9 = vector.load %arg1[%c0_8, %c0_9, %c1_10] : memref<1x4x32xf32, #tpu.memory_space<vmem>>, vector<1x4x31xf32>
    %10 = vector.shape_cast %9 : vector<1x4x31xf32> to vector<4x31xf32>
    %c8 = arith.constant 8 : index
    %c0_11 = arith.constant 0 : index
    %11 = vector.load %arg7[%c8, %c0_11] : memref<12x32xf32, #tpu.memory_space<vmem>>, vector<4x31xf32>
    tpu.vector_store %arg7[%c8, %c0_11], %10 {strides = array<i32>} : memref<12x32xf32, #tpu.memory_space<vmem>>, vector<4x31xf32>,
    %c0_12 = arith.constant 0 : index
    %c0_13 = arith.constant 0 : index
    %12 = vector.load %arg2[%c0_12, %c0_13] : memref<8x12xf32, #tpu.memory_space<vmem>>, vector<8x12xf32>
    %c0_14 = arith.constant 0 : index
    %c0_15 = arith.constant 0 : index
    %13 = vector.load %arg7[%c0_14, %c0_15] : memref<12x32xf32, #tpu.memory_space<vmem>>, vector<12x32xf32>
    %cst = arith.constant dense<0.000000e+00> : vector<8x32xf32>
    %14 = tpu.matmul %12, %13, %cst {dimension_numbers = #tpu.dot_dimension_numbers<[1], [0], [0], [1], [0, 0, 1, 1], [], []>} : vector<8x12xf32>, vector<12x32xf32>, vector<8x32xf32> -> vector<8x32xf32>
    %c0_16 = arith.constant 0 : index
    %c0_17 = arith.constant 0 : index
    %15 = vector.load %arg3[%c0_16, %c0_17] : memref<8x1xf32, #tpu.memory_space<vmem>>, vector<8x1xf32>
    %16 = vector.broadcast %15 : vector<8x1xf32> to vector<8x32xf32>
    %17 = arith.addf %14, %16 : vector<8x32xf32>
    %18 = arith.index_cast %arg0 : i32 to index
    %c0_18 = arith.constant 0 : index
    %c0_19 = arith.constant 0 : index
    %19 = vector.load %arg8[%18, %c0_18, %c0_19] : memref<4x8x32xf32, #tpu.memory_space<vmem>>, vector<1x8x32xf32>
    %20 = vector.shape_cast %19 : vector<1x8x32xf32> to vector<8x32xf32>
    %21 = vector.shape_cast %17 : vector<8x32xf32> to vector<1x8x32xf32>
    tpu.vector_store %arg8[%18, %c0_18, %c0_19], %21 {strides = array<i32>} : memref<4x8x32xf32, #tpu.memory_space<vmem>>, vector<1x8x32xf32>,
    %c3_i32 = arith.constant 3 : i32
    %22 = arith.cmpi eq, %arg0, %c3_i32 : i32
    %23 = arith.extui %22 : i1 to i32
    %c0_i32_20 = arith.constant 0 : i32
    %24 = arith.cmpi ne, %23, %c0_i32_20 : i32
    scf.if %24 {
      %c0_21 = arith.constant 0 : index
      %c0_22 = arith.constant 0 : index
      %c0_23 = arith.constant 0 : index
      %25 = vector.load %arg8[%c0_21, %c0_22, %c0_23] : memref<4x8x32xf32, #tpu.memory_space<vmem>>, vector<4x8x32xf32>
      %cst_24 = arith.constant dense<0.000000e+00> : vector<4x8xf32>
      %26 = vector.multi_reduction <add>, %25, %cst_24 [2] : vector<4x8x32xf32> to vector<4x8xf32>
      %27 = vector.shape_cast %26 : vector<4x8xf32> to vector<4x8x1xf32>
      %cst_25 = arith.constant 3.200000e+01 : f32
      %28 = vector.broadcast %cst_25 : f32 to vector<4x8x1xf32>
      %29 = arith.divf %27, %28 : vector<4x8x1xf32>
      %cst_26 = arith.constant dense<0.000000e+00> : vector<8x1xf32>
      %30 = vector.multi_reduction <add>, %29, %cst_26 [0] : vector<4x8x1xf32> to vector<8x1xf32>
      %31 = vector.shape_cast %30 : vector<8x1xf32> to vector<1x8x1xf32>
      %cst_27 = arith.constant 4.000000e+00 : f32
      %32 = vector.broadcast %cst_27 : f32 to vector<1x8x1xf32>
      %33 = arith.divf %31, %32 : vector<1x8x1xf32>
      %34 = vector.broadcast %33 : vector<1x8x1xf32> to vector<4x8x32xf32>
      %35 = arith.subf %25, %34 : vector<4x8x32xf32>
      %36 = arith.mulf %35, %35 : vector<4x8x32xf32>
      %cst_28 = arith.constant dense<0.000000e+00> : vector<4x8xf32>
      %37 = vector.multi_reduction <add>, %36, %cst_28 [2] : vector<4x8x32xf32> to vector<4x8xf32>
      %38 = vector.shape_cast %37 : vector<4x8xf32> to vector<4x8x1xf32>
      %cst_29 = arith.constant 3.200000e+01 : f32
      %39 = vector.broadcast %cst_29 : f32 to vector<4x8x1xf32>
      %40 = arith.divf %38, %39 : vector<4x8x1xf32>
      %cst_30 = arith.constant dense<0.000000e+00> : vector<8x1xf32>
      %41 = vector.multi_reduction <add>, %40, %cst_30 [0] : vector<4x8x1xf32> to vector<8x1xf32>
      %42 = vector.shape_cast %41 : vector<8x1xf32> to vector<1x8x1xf32>
      %cst_31 = arith.constant 4.000000e+00 : f32
      %43 = vector.broadcast %cst_31 : f32 to vector<1x8x1xf32>
      %44 = arith.divf %42, %43 : vector<1x8x1xf32>
      %c0_32 = arith.constant 0 : index
      %c0_33 = arith.constant 0 : index
      %45 = vector.load %arg4[%c0_32, %c0_33] : memref<8x1xf32, #tpu.memory_space<vmem>>, vector<8x1xf32>
      %cst_34 = arith.constant 9.99999974E-6 : f32
      %46 = vector.broadcast %cst_34 : f32 to vector<1x8x1xf32>
      %47 = arith.addf %44, %46 : vector<1x8x1xf32>
      %48 = math.rsqrt %47 : vector<1x8x1xf32>
      %49 = vector.shape_cast %45 : vector<8x1xf32> to vector<1x8x1xf32>
      %50 = arith.mulf %49, %48 : vector<1x8x1xf32>
      %c0_35 = arith.constant 0 : index
      %c0_36 = arith.constant 0 : index
      %51 = vector.load %arg5[%c0_35, %c0_36] : memref<8x1xf32, #tpu.memory_space<vmem>>, vector<8x1xf32>
      %52 = arith.mulf %33, %50 : vector<1x8x1xf32>
      %53 = vector.shape_cast %51 : vector<8x1xf32> to vector<1x8x1xf32>
      %54 = arith.subf %53, %52 : vector<1x8x1xf32>
      %55 = vector.broadcast %50 : vector<1x8x1xf32> to vector<4x8x32xf32>
      %56 = arith.mulf %25, %55 : vector<4x8x32xf32>
      %57 = vector.broadcast %54 : vector<1x8x1xf32> to vector<4x8x32xf32>
      %58 = arith.addf %56, %57 : vector<4x8x32xf32>
      %cst_37 = arith.constant 0.000000e+00 : f32
      %59 = vector.broadcast %cst_37 : f32 to vector<4x8x32xf32>
      %60 = arith.maximumf %58, %59 : vector<4x8x32xf32>
      %61 = vector.shape_cast %60 : vector<4x8x32xf32> to vector<32x32xf32>
      %62 = tpu.iota {dimensions = array<i32: 0>} : vector<32x16xi32>
      %63 = tpu.iota {dimensions = array<i32: 1>} : vector<32x16xi32>
      %c2_i32 = arith.constant 2 : i32
      %64 = vector.broadcast %c2_i32 : i32 to vector<32x16xi32>
      %65 = arith.muli %63, %64 : vector<32x16xi32>
      %c0_i32_38 = arith.constant 0 : i32
      %66 = vector.broadcast %c0_i32_38 : i32 to vector<32x16xi32>
      %67 = arith.addi %65, %66 : vector<32x16xi32>
      %68 = arith.cmpi eq, %62, %67 : vector<32x16xi32>
      %69 = arith.extui %68 : vector<32x16xi1> to vector<32x16xi32>
      %70 = arith.sitofp %69 : vector<32x16xi32> to vector<32x16xf32>
      %cst_39 = arith.constant dense<0.000000e+00> : vector<32x16xf32>
      %71 = tpu.matmul %61, %70, %cst_39 {dimension_numbers = #tpu.dot_dimension_numbers<[1], [0], [0], [1], [0, 0, 1, 1], [], []>} : vector<32x32xf32>, vector<32x16xf32>, vector<32x16xf32> -> vector<32x16xf32>
      %c2_i32_40 = arith.constant 2 : i32
      %72 = vector.broadcast %c2_i32_40 : i32 to vector<32x16xi32>
      %73 = arith.muli %63, %72 : vector<32x16xi32>
      %c1_i32 = arith.constant 1 : i32
      %74 = vector.broadcast %c1_i32 : i32 to vector<32x16xi32>
      %75 = arith.addi %73, %74 : vector<32x16xi32>
      %76 = arith.cmpi eq, %62, %75 : vector<32x16xi32>
      %77 = arith.extui %76 : vector<32x16xi1> to vector<32x16xi32>
      %78 = arith.sitofp %77 : vector<32x16xi32> to vector<32x16xf32>
      %cst_41 = arith.constant dense<0.000000e+00> : vector<32x16xf32>
      %79 = tpu.matmul %61, %78, %cst_41 {dimension_numbers = #tpu.dot_dimension_numbers<[1], [0], [0], [1], [0, 0, 1, 1], [], []>} : vector<32x32xf32>, vector<32x16xf32>, vector<32x16xf32> -> vector<32x16xf32>
      %80 = arith.maximumf %71, %79 : vector<32x16xf32>
      %81 = vector.shape_cast %80 : vector<32x16xf32> to vector<4x8x16xf32>
      %c0_42 = arith.constant 0 : index
      %c0_43 = arith.constant 0 : index
      %c0_44 = arith.constant 0 : index
      %82 = vector.load %arg6[%c0_42, %c0_43, %c0_44] : memref<4x8x16xf32, #tpu.memory_space<vmem>>, vector<4x8x16xf32>
      tpu.vector_store %arg6[%c0_42, %c0_43, %c0_44], %81 {strides = array<i32>} : memref<4x8x16xf32, #tpu.memory_space<vmem>>, vector<4x8x16xf32>,
    } else {
    }
    return
  }
  func.func @transform_0(%arg0: i32) -> (i32, i32, i32) {
    %c0_i32 = arith.constant 0 : i32
    %c0_i32_0 = arith.constant 0 : i32
    %c0_i32_1 = arith.constant 0 : i32
    return %arg0, %c0_i32, %c0_i32_0 : i32, i32, i32
  }
  func.func @transform_1(%arg0: i32) -> (i32, i32) {
    %c0_i32 = arith.constant 0 : i32
    %c0_i32_0 = arith.constant 0 : i32
    %c0_i32_1 = arith.constant 0 : i32
    return %c0_i32, %c0_i32_0 : i32, i32
  }
  func.func @transform_2(%arg0: i32) -> (i32, i32) {
    %c0_i32 = arith.constant 0 : i32
    %c0_i32_0 = arith.constant 0 : i32
    %c0_i32_1 = arith.constant 0 : i32
    return %c0_i32, %c0_i32_0 : i32, i32
  }
  func.func @transform_3(%arg0: i32) -> (i32, i32) {
    %c0_i32 = arith.constant 0 : i32
    %c0_i32_0 = arith.constant 0 : i32
    %c0_i32_1 = arith.constant 0 : i32
    return %c0_i32, %c0_i32_0 : i32, i32
  }
  func.func @transform_4(%arg0: i32) -> (i32, i32) {
    %c0_i32 = arith.constant 0 : i32
    %c0_i32_0 = arith.constant 0 : i32
    %c0_i32_1 = arith.constant 0 : i32
    return %c0_i32, %c0_i32_0 : i32, i32
  }
  func.func @transform_5(%arg0: i32) -> (i32, i32, i32) {
    %c0_i32 = arith.constant 0 : i32
    %c0_i32_0 = arith.constant 0 : i32
    %c0_i32_1 = arith.constant 0 : i32
    %c0_i32_2 = arith.constant 0 : i32
    return %c0_i32, %c0_i32_0, %c0_i32_1 : i32, i32, i32
  }
}

</mosaic_0001>

<bundles_post_ra>
// kernel: tpu_custom_call.1
= control target key start
LH: loop header
LB: loop body
LE: loop exit
PB: predicated region body
PF: predicated region fallthrough
CT: control target
= control target key end

     0   :  { %10 = vsyncpa [#allocation5], 0  ;;  %s911_s18 = smov 0   ;;  %s1004_s0 = inlined_call_operand.vmem [shape: f32[4,4,32], index: 0, kind: input, shape index: {}]   ;;  %s1005_s1 = inlined_call_operand.vmem [shape: f32[8,12], index: 1, kind: input, shape index: {}]   ;;  %s1006_s2 = inlined_call_operand.vmem [shape: f32[8,1], index: 2, kind: input, shape index: {}]   ;;  %s1007_s3 = inlined_call_operand.vmem [shape: f32[8,1], index: 3, kind: input, shape index: {}]   ;;  %s1008_s4 = inlined_call_operand.vmem [shape: f32[8,1], index: 4, kind: input, shape index: {}]   ;;  %s1009_s5 = inlined_call_operand.hbm [shape: f32[4,8,16], index: 5, kind: output, shape index: {}]  }
   0x1 LB: > { %s917_s19 = sadd.s32 4294967295, %s866_s18   ;;  %p688_p0 = scmp.ge.s32.totalorder %s866_s18, 1  ;;  %s866_s18 = sphi %s911_s18, %s16_s18  }
   0x2   : > { %p182_p1 = scmp.lt.s32.totalorder %s866_s18, 5 }
   0x4   : > { %p183_p2 = pnand %p688_p0, %p182_p1 }
   0x5   : > { %p204_p3 = scmp.lt.s32.totalorder (!%p183_p2), %s917_s19, 3  ;;  %p690_p4 = scmp.ne.s32.totalorder (!%p183_p2), %s917_s19, 0 }
   0x6   : > { %186 = sbr.rel (%p183_p2) target bundleno = 1090 (0x442), region = 40 }
   0xd   : > { %s205_s20 = scalar_select %p204_p3, %s917_s19, 3 }
   0xe   : > { %211 = sbr.rel (%p690_p4) target bundleno = 21 (0x15), region = 44  ;;  %vm212_vm0 = vcmask (!%p690_p4), 261120   ;;  %vm214_vm1 = vcmask (!%p690_p4), 257024   ;;  %v868_v0 = vmov (!%p690_p4), 0.0  }
   0xf   : > { %s689_s21 = sshll.u32 %s205_s20, 2  ;;  %213 = vst.msk [vmem:[#allocation2] sm:$0xff] (!%p690_p4), %vm212_vm0, %v868_v0 }
  0x10   : > { %s207_s24 = scalar_lea.vmem %s1004_s0, %s689_s21  ;;  %215 = vst.msk [vmem:[#allocation2 + $0x8] sm:$0xf] (!%p690_p4), %vm214_vm1, %v868_v0 }
  0x15 PF: > { %v216_v1 = vld [vmem:[%s207_s24] sm:$0xf]  ;;  %s869_s25 = smov 1   ;;  %vm224_vm2 = vcmask 257024   ;;  %v870_v4 = vmov 0.0|0.0   ;;  %vm871_vm3 = vmmov 0  }
  0x16   : > { %218 = vrot.lane.b32.xlu0 %v216_v1, %s869_s25  ;;  %v223_v2 = vld [vmem:[%s207_s24] sm:$0xf]  ;;  %777 = vmatprep.subr.bf16.mxu0 %v870_v4  ;;  %v872_v5 = vmov 0.0   ;;  %s873_s26 = smov 127   ;;  %v874_v7 = vmov 0   ;;  %vm221_vm4 = vcmask 257032  }
  0x17   : > { %v226_v3 = vld [vmem:[%s207_s24] sm:$0xf]  ;;  %225 = vst.msk [vmem:[#allocation2 + $0x4] sm:$0xf] %vm224_vm2, %v223_v2  ;;  %746 = vmatprep.mubr.msk.f32.mxu0 %vm871_vm3, %v872_v5  ;;  %824 = vset.pattern.permute.xlu1 %v874_v7  ;;  %vm231_vm5 = vcmask 248832   ;;  %vm246_vm6 = vcmask 1043456  }
  0x18   : > { %v236_v6 = vld [vmem:[%s1006_s2] sm:$0xff]  ;;  %825 = vset.pattern.permute.xlu0 %v874_v7  ;;  %vm875_vm7 = vmmov 1   ;;  %vm242_vm9 = vcmask 97280   ;;  %s693_s6 = sshll.u32 %s917_s19, 3  ;;  %vm322_vm10 = vcmask 261120   ;;  %p694_p5 = scmp.ne.s32.totalorder %s917_s19, 3 }
  0x19   : > { %239 = vperm.xlu1 %824, %v236_v6   ;;  %vm779_vm8 = vmpackc.low %vm246_vm6, %vm875_vm7  ;;  %v233_v13 = vld [vmem:[%s1005_s1] sm:$0xff]  ;;  %s321_s7 = scalar_lea.vmem [#allocation3], %s693_s6  ;;  %v876_v50 = vmov (!%p694_p5), 0   ;;  %v411_v0 = vlaneseq (!%p694_p5)  ;;  %vm630_vm7 = vcmask (!%p694_p5), 130048  }
  0x1a   : > { %228 = vrot.lane.b32.xlu0 %v226_v3, %s873_s26  ;;  %v382_v2 = vld [vmem:[%s1007_s3] sm:$0xff] (!%p694_p5) }
  0x1b   : > { %826 = vset.pattern.permute.xlu0 (!%p694_p5), %v876_v50  ;;  %v417_v1 = vand.u32 (!%p694_p5), 127, %v411_v0  ;;  %v412_v3 = vshrl.u32 (!%p694_p5), %v411_v0, 7 }
  0x1d   : > { %827 = vset.pattern.permute.xlu1 (!%p694_p5), %v876_v50  ;;  %v418_v4 = vmul.u32 (!%p694_p5), 2, %v417_v1  ;;  %v413_v6 = vadd.s32 (!%p694_p5), 8, %v412_v3 }
  0x1f   : > { %v528_v7 = vadd.s32 (!%p694_p5), 1, %v418_v4  ;;  %vm419_vm11 = vcmp.eq.s32.totalorder (!%p694_p5), %v412_v3, %v418_v4  ;;  %vm420_vm12 = vcmp.eq.s32.totalorder (!%p694_p5), %v413_v6, %v418_v4 }
  0x20   : > { %vm781_vm15 = vmpackc.low (!%p694_p5), %vm420_vm12, %vm419_vm11 }
  0x21   : > { %vm529_vm13 = vcmp.eq.s32.totalorder (!%p694_p5), %v412_v3, %v528_v7  ;;  %vm530_vm14 = vcmp.eq.s32.totalorder (!%p694_p5), %v413_v6, %v528_v7 }
  0x22   : > { %vm789_vm0 = vmpackc.low (!%p694_p5), %vm530_vm14, %vm529_vm13 }
  0x88   : > { %v219_v8 = vpop.permute.xlu0 %218 }
  0x89   : > { %222 = vst.msk [vmem:[#allocation2] sm:$0xf] %vm221_vm4, %v219_v8 }
  0x8c   : > { %v229_v9 = vpop.permute.xlu0 %228 }
  0x8d   : > { %232 = vst.msk [vmem:[#allocation2 + $0x8] sm:$0xf] %vm231_vm5, %v229_v9  ;;  %v386_v9 = vld [vmem:[%s1008_s4] sm:$0xff] (!%p694_p5) }
  0x90   : > { %v234_v10 = vld [vmem:[#allocation2] sm:$0xff] }
  0x94   : > { %v235_v11 = vld [vmem:[#allocation2 + $0x8] sm:$0xf] }
  0x95   : > { %v778_v12 = vpack.c.bf16 %v235_v11, %v234_v10  ;;  %v877_v11 = vmov (!%p694_p5), 1.0|1.0  }
  0x96   : > { %790 = vmatprep.subr.msk.bf16.mxu1 (!%p694_p5), %vm789_vm0, %v877_v11 }
  0x97   : > { %780 = vmatpush3.bf16.msk.msra.mxu0 %vm779_vm8, %v778_v12  ;;  %v414_v12 = vadd.s32 (!%p694_p5), 16, %v412_v3  ;;  %792 = vmatpush3.bf16.msk.msra.mxu1 (!%p694_p5), %vm789_vm0, %v877_v11 }
  0x98   : > { %v240_v14 = vpop.permute.xlu1 %239  ;;  %782 = vmatprep.subr.msk.bf16.mxu0 (!%p694_p5), %vm781_vm15, %v877_v11 }
  0x99   : > { %vm421_vm1 = vcmp.eq.s32.totalorder (!%p694_p5), %v414_v12, %v418_v4  ;;  %vm531_vm3 = vcmp.eq.s32.totalorder (!%p694_p5), %v414_v12, %v528_v7 }
  0x9a   : > { %747 = vmatmul.mubr.msk.f32.vlgmr.msra.gmra.mrb[0].mxu0 %vm242_vm9, %v233_v13  ;;  %v415_v13 = vadd.s32 (!%p694_p5), 24, %v412_v3 }
  0x9b   : > { %784 = vmatpush3.bf16.msk.msra.mxu0 (!%p694_p5), %vm781_vm15, %v877_v11 }
  0x9c   : > { %vm422_vm2 = vcmp.eq.s32.totalorder (!%p694_p5), %v415_v13, %v418_v4  ;;  %vm532_vm4 = vcmp.eq.s32.totalorder (!%p694_p5), %v415_v13, %v528_v7 }
  0x9d   : > { %vm785_vm5 = vmpackc.low (!%p694_p5), %vm422_vm2, %vm421_vm1 }
  0x9e   : > { %786 = vmatprep.subr.msk.bf16.mxu0 (!%p694_p5), %vm785_vm5, %v877_v11  ;;  %vm793_vm6 = vmpackc.low (!%p694_p5), %vm532_vm4, %vm531_vm3 }
  0x9f   : > { %794 = vmatprep.subr.msk.bf16.mxu1 (!%p694_p5), %vm793_vm6, %v877_v11  ;;  %788 = vmatpush3.bf16.msk.msra.mxu0 (!%p694_p5), %vm785_vm5, %v877_v11 }
  0xa0   : > { %796 = vmatpush3.bf16.msk.msra.mxu1 (!%p694_p5), %vm793_vm6, %v877_v11 }
 0x16a   : > { %327 = sbr.rel (%p694_p5) target bundleno = 1064 (0x428), region = 48 }
 0x16d   : > { %v316_v15 = vpop.f32.mrb[0].mxu0 }
 0x16e   : > { %v317_v16 = vadd.f32 %v316_v15, %v240_v14  ;;  %v748_v17 = vpop.f32.mrb[1].mxu0 }
 0x170   : > { %323 = vst.msk [vmem:[%s321_s7] sm:$0xff] %vm322_vm10, %v317_v16 }
 0x177   : > { %v936_v18 = vld [vmem:[#allocation3] sm:$0xff]  ;;  %v938_v19 = vld [vmem:[#allocation3 + $0x10] sm:$0xff]  ;;  %v940_v20 = vld [vmem:[#allocation3 + $0x8] sm:$0xff] }
 0x178   : > { %v332_v21 = vsel %vm322_vm10, %v936_v18, 0.0  ;;  %v338_v22 = vsel %vm322_vm10, %v938_v19, 0.0  ;;  %v946_v23 = vld [vmem:[#allocation3 + $0x18] sm:$0xff]  ;;  %v335_v24 = vsel %vm322_vm10, %v940_v20, 0.0 }
 0x179   : > { %333 = vadd.xlane.f32.xlu0 %v332_v21  ;;  %339 = vadd.xlane.f32.xlu1 %v338_v22  ;;  %v341_v25 = vsel %vm322_vm10, %v946_v23, 0.0 }
 0x17d   : > { %336 = vadd.xlane.f32.xlu0 %v335_v24  ;;  %342 = vadd.xlane.f32.xlu1 %v341_v25 }
 0x206   : > { %v334_v26 = vpop.xlane.xlu0 %333  ;;  %v340_v27 = vpop.xlane.xlu1 %339 }
 0x207   : > { %v345_v30 = vmul.f32 0.03125, %v334_v26  ;;  %v347_v32 = vmul.f32 0.03125, %v340_v27 }
 0x20a   : > { %v337_v28 = vpop.xlane.xlu0 %336  ;;  %v343_v29 = vpop.xlane.xlu1 %342 }
 0x20b   : > { %v346_v31 = vmul.f32 0.03125, %v337_v28  ;;  %v348_v34 = vmul.f32 0.03125, %v343_v29 }
 0x20d   : > { %v349_v33 = vadd.f32 %v346_v31, %v345_v30 }
 0x20f   : > { %v350_v35 = vadd.f32 %v349_v33, %v347_v32 }
 0x211   : > { %v351_v36 = vadd.f32 %v350_v35, %v348_v34 }
 0x213   : > { %v353_v37 = vmul.f32 0.25, %v351_v36 }
 0x215   : > { %v355_v38 = vsub.f32 %v940_v20, %v353_v37  ;;  %v354_v39 = vsub.f32 %v936_v18, %v353_v37  ;;  %v357_v40 = vsub.f32 %v946_v23, %v353_v37  ;;  %v356_v41 = vsub.f32 %v938_v19, %v353_v37 }
 0x217   : > { %v359_v42 = vmul.f32 %v355_v38, %v355_v38  ;;  %v358_v43 = vmul.f32 %v354_v39, %v354_v39  ;;  %v361_v46 = vmul.f32 %v357_v40, %v357_v40  ;;  %v360_v47 = vmul.f32 %v356_v41, %v356_v41 }
 0x219   : > { %v365_v44 = vsel %vm322_vm10, %v359_v42, 0.0  ;;  %v362_v45 = vsel %vm322_vm10, %v358_v43, 0.0  ;;  %v371_v48 = vsel %vm322_vm10, %v361_v46, 0.0  ;;  %v368_v49 = vsel %vm322_vm10, %v360_v47, 0.0 }
 0x21a   : > { %366 = vadd.xlane.f32.xlu1 %v365_v44  ;;  %363 = vadd.xlane.f32.xlu0 %v362_v45 }
 0x21e   : > { %372 = vadd.xlane.f32.xlu1 %v371_v48  ;;  %369 = vadd.xlane.f32.xlu0 %v368_v49 }
 0x2a7   : > { %v367_v51 = vpop.xlane.xlu1 %366  ;;  %v364_v52 = vpop.xlane.xlu0 %363 }
 0x2a8   : > { %v375_v53 = vmul.f32 0.03125, %v367_v51  ;;  %v374_v54 = vmul.f32 0.03125, %v364_v52 }
 0x2aa   : > { %v378_v57 = vadd.f32 %v375_v53, %v374_v54 }
 0x2ab   : > { %v373_v55 = vpop.xlane.xlu1 %372  ;;  %v370_v56 = vpop.xlane.xlu0 %369 }
 0x2ac   : > { %v376_v58 = vmul.f32 0.03125, %v370_v56  ;;  %v377_v59 = vmul.f32 0.03125, %v373_v55 }
 0x2ae   : > { %v379_v60 = vadd.f32 %v378_v57, %v376_v58 }
 0x2b0   : > { %v380_v61 = vadd.f32 %v379_v60, %v377_v59 }
 0x2b2   : > { %v381_v62 = vmul.f32 0.25, %v380_v61 }
 0x2b4   : > { %v383_v63 = vadd.f32 1e-05, %v381_v62 }
 0x2b6   : > { %828 = vrsqrt.f32 %v383_v63 }
 0x2c0   : > { %v829_v5 = vpop.eup %828 }
 0x2c1   : > { %v385_v8 = vmul.f32 %v829_v5, %v382_v2 }
 0x2c3   : > { %391 = vperm.xlu0 %826, %v385_v8   ;;  %v387_v10 = vmul.f32 %v385_v8, %v353_v37 }
 0x2c5   : > { %v388_v14 = vsub.f32 %v386_v9, %v387_v10 }
 0x2c7   : > { %400 = vperm.xlu1 %827, %v388_v14  }
 0x342   : > { %v392_v15 = vpop.permute.xlu0 %391 }
 0x343   : > { %v394_v16 = vmul.f32 %v392_v15, %v936_v18  ;;  %v395_v17 = vmul.f32 %v392_v15, %v940_v20  ;;  %v396_v21 = vmul.f32 %v392_v15, %v938_v19  ;;  %v397_v27 = vmul.f32 %v392_v15, %v946_v23 }
 0x346   : > { %v401_v22 = vpop.permute.xlu1 %400 }
 0x347   : > { %v404_v24 = vadd.f32 %v401_v22, %v395_v17  ;;  %v405_v25 = vadd.f32 %v401_v22, %v396_v21  ;;  %v403_v26 = vadd.f32 %v401_v22, %v394_v16  ;;  %v406_v30 = vadd.f32 %v401_v22, %v397_v27 }
 0x349   : > { %v407_v28 = vmax.f32 %v403_v26, 0.0  ;;  %v408_v29 = vmax.f32 %v404_v24, 0.0  ;;  %v409_v31 = vmax.f32 %v405_v25, 0.0  ;;  %v410_v18 = vmax.f32 %v406_v30, 0.0 }
 0x34b   : > { %757 = vmatprep.mubr.msk.f32.mxu0 %vm322_vm10, %v407_v28  ;;  %771 = vmatprep.mubr.msk.f32.mxu1 %vm322_vm10, %v407_v28 }
 0x34c   : > { %758 = vmatmul.mubr.msk.f32.vlgmr.msra.gmra.mrb[0].mxu0 %vm322_vm10, %v408_v29  ;;  %772 = vmatmul.mubr.msk.f32.vlgmr.msra.gmra.mrb[0].mxu1 %vm322_vm10, %v408_v29 }
 0x34d   : > { %760 = vmatprep.mubr.msk.f32.mxu0 %vm322_vm10, %v409_v31  ;;  %774 = vmatprep.mubr.msk.f32.mxu1 %vm322_vm10, %v409_v31 }
 0x350   : > { %761 = vmatmul.mubr.msk.f32.gmra.mrb[2].mxu0 %vm322_vm10, %v410_v18  ;;  %775 = vmatmul.mubr.msk.f32.gmra.mrb[2].mxu1 %vm322_vm10, %v410_v18 }
 0x41f   : > { %v759_v19 = vpop.f32.mrb[0].mxu0  ;;  %v773_v20 = vpop.f32.mrb[0].mxu1 }
 0x420   : > { %v627_v23 = vmax.f32 %v759_v19, %v773_v20  ;;  %v509_v32 = vpop.f32.mrb[1].mxu0  ;;  %v607_v33 = vpop.f32.mrb[1].mxu1 }
 0x421   : > { %v626_v34 = vmax.f32 %v509_v32, %v607_v33 }
 0x422   : > { %632 = vst.msk [vmem:[#allocation4 + $0x8] sm:$0xff] %vm630_vm7, %v627_v23 }
 0x423   : > { %631 = vst.msk [vmem:[#allocation4] sm:$0xff] %vm630_vm7, %v626_v34  ;;  %v762_v35 = vpop.f32.mrb[2].mxu0  ;;  %v776_v36 = vpop.f32.mrb[2].mxu1 }
 0x424   : > { %v629_v37 = vmax.f32 %v762_v35, %v776_v36  ;;  %v519_v38 = vpop.f32.mrb[3].mxu0  ;;  %v617_v39 = vpop.f32.mrb[3].mxu1 }
 0x425   : > { %v628_v40 = vmax.f32 %v519_v38, %v617_v39 }
 0x426   : > { %634 = vst.msk [vmem:[#allocation4 + $0x18] sm:$0xff] %vm630_vm7, %v629_v37 }
 0x427   : > { %633 = vst.msk [vmem:[#allocation4 + $0x10] sm:$0xff] %vm630_vm7, %v628_v40 }
 0x428 PF: > { %p801_p6 = scmp.eq.s32.totalorder %s917_s19, 3  ;;  %s878_s12 = smov [#allocation4]  }
 0x429   : > { %s641_s13 = sshll.u32 %s878_s12, 4  ;;  %s642_s13 = int_to_ptr.vmem [resolvable:$true] %s641_s13 }
 0x42a   : > { %s830_s14 = scalar_lea.vmem %s642_s13, 512  ;;  %p837_p10 = scmp.lt.s32.totalorder %s642_s13, %s642_s13 }
 0x42b   : > { %p831_p7 = scmp.ne.s32.totalorder %s642_s13, %s830_s14  ;;  %p838_p11 = scmp.lt.s32.totalorder %s830_s14, %s830_s14 }
 0x42d   : > { %p832_p8 = pnand %p831_p7, %p801_p6  ;;  %p839_p12 = por %p838_p11, %p837_p10 }
 0x42f   : > { %p833_p9 = pneg %p832_p8 }
 0x431   : > { %p840_p13 = pnand %p839_p12, %p833_p9 }
 0x433   : > { %843 = shalt.err (!%p840_p13)
}
 0x434   : > { %s844_s17 = scalar_lea.hbm %s1009_s5, 512 }
 0x435   : > { %p845_p0 = scmp.ne.s32.totalorder %s1009_s5, %s844_s17  ;;  %p850_p3 = scmp.lt.u32.totalorder %s844_s17, %s1009_s5 }
 0x437   : > { %p846_p1 = pnand %p845_p0, %p801_p6 }
 0x439   : > { %p847_p2 = pneg %p846_p1 }
 0x43b   : > { %p852_p4 = pnand %p850_p3, %p847_p2 }
 0x43d   : > { %855 = shalt.err (!%p852_p4)
}
 0x43e   : > { %s879_s24 = smov 128   ;;  %s880_s25 = smov 8  }
 0x43f   : > { %798 = dma.vmem_to_hbm [thread:$0]  (%p801_p6), %s642_s13, 512, %s1009_s5, [#allocation5], %s879_s24, %s879_s24, %s880_s25  }
 0x440   : > { %861 = dma.done.wait (%p801_p6), [#allocation5], 512  }
 0x441   : > { %863 = vsyncadd (%p801_p6), [#allocation5], 4294966784 }
 0x442 PF: > { %s16_s18 = sadd.s32 1, %s866_s18  }
 0x443   : > { %p13_p5 = scmp.ge.s32.totalorder %s16_s18, 6  }
 0x445   :  { %15 = sbr.rel (!%p13_p5) target bundleno = 1 (0x1), region = 76 }
 0x44c   :  { %657 = vsyncpa [#allocation5], 1 }
 0x44d   :  { %659 = vsyncpa [#allocation5 + $0x1], 1 }

</bundles_post_ra>
